<compile_context>
chip_gen: v7x
topology: tpu7x:2x2x1
jax: 0.10.0
libtpu: 0.0.40
codegen_flags: <defaults>
</compile_context>

<pallas_src>
import functools

import jax
import jax.numpy as jnp
from jax.experimental import pallas as pl
from jax.experimental.pallas import tpu as pltpu


def _triplet_kernel(a_ref, p_ref, n_ref, out_ref, *, margin, eps, feat, pack):
    """One tile of packed rows.

    a/p/n blocks: (tb, pack*feat) in native dtype; out block: (tb, pack) f32.
    Lane segment j (lanes [j*feat, (j+1)*feat)) of packed row r holds original
    batch row r*pack + j.
    """
    a = a_ref[...].astype(jnp.float32)
    p = p_ref[...].astype(jnp.float32)
    n = n_ref[...].astype(jnp.float32)

    # Full-lane-width elementwise products (VPU, full vreg utilization).
    sq_a = a * a
    sq_p = p * p
    sq_n = n * n
    pr_ap = a * p
    pr_an = a * n

    eps2 = eps * eps

    # Per-segment lane reductions; `pack` is a small static int so this unrolls.
    for j in range(pack):
        sl = slice(j * feat, (j + 1) * feat)
        ss_a = jnp.sum(sq_a[:, sl], axis=1, keepdims=True)
        ss_p = jnp.sum(sq_p[:, sl], axis=1, keepdims=True)
        ss_n = jnp.sum(sq_n[:, sl], axis=1, keepdims=True)
        d_ap = jnp.sum(pr_ap[:, sl], axis=1, keepdims=True)
        d_an = jnp.sum(pr_an[:, sl], axis=1, keepdims=True)

        # torch cosine_similarity: cos = dot / max(||x||*||y||, eps)
        #                              = dot * rsqrt(max(ss_x*ss_y, eps^2))
        cos_ap = d_ap * jax.lax.rsqrt(jnp.maximum(ss_a * ss_p, eps2))
        cos_an = d_an * jax.lax.rsqrt(jnp.maximum(ss_a * ss_n, eps2))

        # (1 - cos_ap) - (1 - cos_an) + margin == cos_an - cos_ap + margin
        out_ref[:, j:j + 1] = jnp.maximum(cos_an - cos_ap + margin, 0.0)

    # TODO(synk): the reference forward() prints the per-batch mean distances;
    # that host-side side effect is omitted from the kernel.


def _choose_block_rows(rows, width, itemsize, vmem_budget_bytes=16 << 20,
                       max_rows=2048):
    """Rows per tile: 3 input streams x 2 pipeline buffers in native dtype."""
    per_row_bytes = 3 * 2 * width * itemsize
    tb = max(8, (vmem_budget_bytes // per_row_bytes) // 8 * 8)
    tb = min(tb, max_rows)
    if tb >= rows:
        return rows      # single block covering the whole (possibly small) array
    return tb            # multiple of 8; ragged last block handled by Pallas


def triplet_loss_cosine(anchor, positive, negative, margin=0.1, eps=1e-8):
    """anchor/positive/negative: (B, D). Returns scalar f32 loss."""
    B, D = anchor.shape
    assert positive.shape == (B, D) and negative.shape == (B, D)

    # Lane packing for narrow feature dims: view k consecutive batch rows as one
    # 128-lane row (zero-copy row-major reshape) so all vreg lanes are active.
    pack = 1
    if D < 128 and 128 % D == 0 and B % (128 // D) == 0:
        pack = 128 // D
    rows = B // pack
    width = pack * D

    a2 = anchor.reshape(rows, width)
    p2 = positive.reshape(rows, width)
    n2 = negative.reshape(rows, width)

    itemsize = jnp.dtype(anchor.dtype).itemsize
    tb = _choose_block_rows(rows, width, itemsize)
    grid = (pl.cdiv(rows, tb),)

    kernel = functools.partial(
        _triplet_kernel,
        margin=float(margin),
        eps=float(eps),
        feat=D,
        pack=pack,
    )

    in_spec = pl.BlockSpec((tb, width), lambda i: (i, 0))
    out_spec = pl.BlockSpec((tb, pack), lambda i: (i, 0))

    per_row = pl.pallas_call(
        kernel,
        out_shape=jax.ShapeDtypeStruct((rows, pack), jnp.float32),
        grid=grid,
        in_specs=[in_spec, in_spec, in_spec],
        out_specs=out_spec,
        compiler_params=pltpu.CompilerParams(
            # Every grid step writes a disjoint output block -> safe to shard
            # the batch axis across TensorCores (megacore on v7x).
            dimension_semantics=("parallel",),
            # Sized to the real footprint (<=16 MiB of input buffers + output +
            # slack); well under v7x's 64 MiB physical VMEM.
            vmem_limit_bytes=32 * 1024 * 1024,
        ),
    )(a2, p2, n2)

    # Final reduction over the true batch in plain JAX (negligible traffic).
    return jnp.sum(per_row.reshape(-1)) / B


def _reference(anchor, positive, negative, margin=0.1, eps=1e-8):
    def cos(x, y):
        denom = jnp.maximum(
            jnp.sqrt(jnp.sum(x * x, axis=1) * jnp.sum(y * y, axis=1)), eps
        )
        return jnp.sum(x * y, axis=1) / denom

    pos = 1.0 - cos(anchor, positive)
    neg = 1.0 - cos(anchor, negative)
    return jnp.mean(jnp.maximum(pos - neg + margin, 0.0))


if __name__ == "__main__":
    # Small case consistent with the module (batch=8, hidden=32): lane-packed
    # path (pack=4), single block.
    k1, k2, k3 = jax.random.split(jax.random.PRNGKey(0), 3)
    B, D = 8, 32
    anchor = jax.random.normal(k1, (B, D), dtype=jnp.float32)
    positive = jax.random.normal(k2, (B, D), dtype=jnp.float32)
    negative = jax.random.normal(k3, (B, D), dtype=jnp.float32)

    loss = jax.block_until_ready(triplet_loss_cosine(anchor, positive, negative, 0.1))
    ref = _reference(anchor, positive, negative, 0.1)
    assert jnp.allclose(loss, ref, atol=1e-5, rtol=1e-4), (loss, ref)

    # Larger f32 case: unpacked path (D=128), multi-block grid + ragged last tile.
    k4, k5, k6 = jax.random.split(jax.random.PRNGKey(1), 3)
    B2, D2 = 2500, 128
    a2 = jax.random.normal(k4, (B2, D2), dtype=jnp.float32)
    p2 = jax.random.normal(k5, (B2, D2), dtype=jnp.float32)
    n2 = jax.random.normal(k6, (B2, D2), dtype=jnp.float32)

    loss2 = jax.block_until_ready(triplet_loss_cosine(a2, p2, n2, 0.1))
    ref2 = _reference(a2, p2, n2, 0.1)
    assert jnp.allclose(loss2, ref2, atol=1e-5, rtol=1e-4), (loss2, ref2)

    # bf16 case: dtype-aware tiling, lane-packed, multi-block + ragged last tile.
    k7, k8, k9 = jax.random.split(jax.random.PRNGKey(2), 3)
    B3, D3 = 9000, 32
    a3 = jax.random.normal(k7, (B3, D3), dtype=jnp.float32).astype(jnp.bfloat16)
    p3 = jax.random.normal(k8, (B3, D3), dtype=jnp.float32).astype(jnp.bfloat16)
    n3 = jax.random.normal(k9, (B3, D3), dtype=jnp.float32).astype(jnp.bfloat16)

    loss3 = jax.block_until_ready(triplet_loss_cosine(a3, p3, n3, 0.1))
    ref3 = _reference(a3.astype(jnp.float32), p3.astype(jnp.float32),
                      n3.astype(jnp.float32), 0.1)
    assert jnp.allclose(loss3, ref3, atol=1e-5, rtol=1e-4), (loss3, ref3)

    print("KERNEL_OK")
</pallas_src>

<mosaic_0001>
module attributes {stable_mosaic.version = 11 : i64} {
  func.func @_triplet_kernel(%arg0: i32, %arg1: memref<2x128xf32, #tpu.memory_space<vmem>>, %arg2: memref<2x128xf32, #tpu.memory_space<vmem>>, %arg3: memref<2x128xf32, #tpu.memory_space<vmem>>, %arg4: memref<2x4xf32, #tpu.memory_space<vmem>>) attributes {dimension_semantics = [#tpu.dimension_semantics<parallel>], iteration_bounds = array<i64: 1>, scalar_prefetch = 0 : i64, scratch_operands = 0 : i64, tpu.core_type = #tpu.core_type<tc>, window_params = [{transform_indices = @transform_0, window_bounds = array<i64: 2, 128>}, {transform_indices = @transform_1, window_bounds = array<i64: 2, 128>}, {transform_indices = @transform_2, window_bounds = array<i64: 2, 128>}, {transform_indices = @transform_3, window_bounds = array<i64: 2, 4>}]} {
    %c0 = arith.constant 0 : index
    %c0_0 = arith.constant 0 : index
    %0 = vector.load %arg1[%c0, %c0_0] : memref<2x128xf32, #tpu.memory_space<vmem>>, vector<2x128xf32>
    %c0_1 = arith.constant 0 : index
    %c0_2 = arith.constant 0 : index
    %1 = vector.load %arg2[%c0_1, %c0_2] : memref<2x128xf32, #tpu.memory_space<vmem>>, vector<2x128xf32>
    %c0_3 = arith.constant 0 : index
    %c0_4 = arith.constant 0 : index
    %2 = vector.load %arg3[%c0_3, %c0_4] : memref<2x128xf32, #tpu.memory_space<vmem>>, vector<2x128xf32>
    %3 = arith.mulf %0, %0 : vector<2x128xf32>
    %4 = arith.mulf %1, %1 : vector<2x128xf32>
    %5 = arith.mulf %2, %2 : vector<2x128xf32>
    %6 = arith.mulf %0, %1 : vector<2x128xf32>
    %7 = arith.mulf %0, %2 : vector<2x128xf32>
    %8 = vector.extract_strided_slice %3 {offsets = [0, 0], sizes = [2, 32], strides = [1, 1]} : vector<2x128xf32> to vector<2x32xf32>
    %cst = arith.constant dense<0.000000e+00> : vector<2xf32>
    %9 = vector.multi_reduction <add>, %8, %cst [1] : vector<2x32xf32> to vector<2xf32>
    %10 = vector.shape_cast %9 : vector<2xf32> to vector<2x1xf32>
    %11 = vector.extract_strided_slice %4 {offsets = [0, 0], sizes = [2, 32], strides = [1, 1]} : vector<2x128xf32> to vector<2x32xf32>
    %cst_5 = arith.constant dense<0.000000e+00> : vector<2xf32>
    %12 = vector.multi_reduction <add>, %11, %cst_5 [1] : vector<2x32xf32> to vector<2xf32>
    %13 = vector.shape_cast %12 : vector<2xf32> to vector<2x1xf32>
    %14 = vector.extract_strided_slice %5 {offsets = [0, 0], sizes = [2, 32], strides = [1, 1]} : vector<2x128xf32> to vector<2x32xf32>
    %cst_6 = arith.constant dense<0.000000e+00> : vector<2xf32>
    %15 = vector.multi_reduction <add>, %14, %cst_6 [1] : vector<2x32xf32> to vector<2xf32>
    %16 = vector.shape_cast %15 : vector<2xf32> to vector<2x1xf32>
    %17 = vector.extract_strided_slice %6 {offsets = [0, 0], sizes = [2, 32], strides = [1, 1]} : vector<2x128xf32> to vector<2x32xf32>
    %cst_7 = arith.constant dense<0.000000e+00> : vector<2xf32>
    %18 = vector.multi_reduction <add>, %17, %cst_7 [1] : vector<2x32xf32> to vector<2xf32>
    %19 = vector.shape_cast %18 : vector<2xf32> to vector<2x1xf32>
    %20 = vector.extract_strided_slice %7 {offsets = [0, 0], sizes = [2, 32], strides = [1, 1]} : vector<2x128xf32> to vector<2x32xf32>
    %cst_8 = arith.constant dense<0.000000e+00> : vector<2xf32>
    %21 = vector.multi_reduction <add>, %20, %cst_8 [1] : vector<2x32xf32> to vector<2xf32>
    %22 = vector.shape_cast %21 : vector<2xf32> to vector<2x1xf32>
    %23 = arith.mulf %10, %13 : vector<2x1xf32>
    %cst_9 = arith.constant 1.000000e-16 : f32
    %24 = vector.broadcast %cst_9 : f32 to vector<2x1xf32>
    %25 = arith.maximumf %23, %24 : vector<2x1xf32>
    %26 = math.rsqrt %25 : vector<2x1xf32>
    %27 = arith.mulf %19, %26 : vector<2x1xf32>
    %28 = arith.mulf %10, %16 : vector<2x1xf32>
    %cst_10 = arith.constant 1.000000e-16 : f32
    %29 = vector.broadcast %cst_10 : f32 to vector<2x1xf32>
    %30 = arith.maximumf %28, %29 : vector<2x1xf32>
    %31 = math.rsqrt %30 : vector<2x1xf32>
    %32 = arith.mulf %22, %31 : vector<2x1xf32>
    %33 = arith.subf %32, %27 : vector<2x1xf32>
    %cst_11 = arith.constant 1.000000e-01 : f32
    %34 = vector.broadcast %cst_11 : f32 to vector<2x1xf32>
    %35 = arith.addf %33, %34 : vector<2x1xf32>
    %cst_12 = arith.constant 0.000000e+00 : f32
    %36 = vector.broadcast %cst_12 : f32 to vector<2x1xf32>
    %37 = arith.maximumf %35, %36 : vector<2x1xf32>
    %c0_13 = arith.constant 0 : index
    %c0_14 = arith.constant 0 : index
    %38 = vector.load %arg4[%c0_13, %c0_14] : memref<2x4xf32, #tpu.memory_space<vmem>>, vector<2x1xf32>
    tpu.vector_store %arg4[%c0_13, %c0_14], %37 {strides = array<i32>} : memref<2x4xf32, #tpu.memory_space<vmem>>, vector<2x1xf32>,
    %39 = vector.extract_strided_slice %3 {offsets = [0, 32], sizes = [2, 32], strides = [1, 1]} : vector<2x128xf32> to vector<2x32xf32>
    %cst_15 = arith.constant dense<0.000000e+00> : vector<2xf32>
    %40 = vector.multi_reduction <add>, %39, %cst_15 [1] : vector<2x32xf32> to vector<2xf32>
    %41 = vector.shape_cast %40 : vector<2xf32> to vector<2x1xf32>
    %42 = vector.extract_strided_slice %4 {offsets = [0, 32], sizes = [2, 32], strides = [1, 1]} : vector<2x128xf32> to vector<2x32xf32>
    %cst_16 = arith.constant dense<0.000000e+00> : vector<2xf32>
    %43 = vector.multi_reduction <add>, %42, %cst_16 [1] : vector<2x32xf32> to vector<2xf32>
    %44 = vector.shape_cast %43 : vector<2xf32> to vector<2x1xf32>
    %45 = vector.extract_strided_slice %5 {offsets = [0, 32], sizes = [2, 32], strides = [1, 1]} : vector<2x128xf32> to vector<2x32xf32>
    %cst_17 = arith.constant dense<0.000000e+00> : vector<2xf32>
    %46 = vector.multi_reduction <add>, %45, %cst_17 [1] : vector<2x32xf32> to vector<2xf32>
    %47 = vector.shape_cast %46 : vector<2xf32> to vector<2x1xf32>
    %48 = vector.extract_strided_slice %6 {offsets = [0, 32], sizes = [2, 32], strides = [1, 1]} : vector<2x128xf32> to vector<2x32xf32>
    %cst_18 = arith.constant dense<0.000000e+00> : vector<2xf32>
    %49 = vector.multi_reduction <add>, %48, %cst_18 [1] : vector<2x32xf32> to vector<2xf32>
    %50 = vector.shape_cast %49 : vector<2xf32> to vector<2x1xf32>
    %51 = vector.extract_strided_slice %7 {offsets = [0, 32], sizes = [2, 32], strides = [1, 1]} : vector<2x128xf32> to vector<2x32xf32>
    %cst_19 = arith.constant dense<0.000000e+00> : vector<2xf32>
    %52 = vector.multi_reduction <add>, %51, %cst_19 [1] : vector<2x32xf32> to vector<2xf32>
    %53 = vector.shape_cast %52 : vector<2xf32> to vector<2x1xf32>
    %54 = arith.mulf %41, %44 : vector<2x1xf32>
    %cst_20 = arith.constant 1.000000e-16 : f32
    %55 = vector.broadcast %cst_20 : f32 to vector<2x1xf32>
    %56 = arith.maximumf %54, %55 : vector<2x1xf32>
    %57 = math.rsqrt %56 : vector<2x1xf32>
    %58 = arith.mulf %50, %57 : vector<2x1xf32>
    %59 = arith.mulf %41, %47 : vector<2x1xf32>
    %cst_21 = arith.constant 1.000000e-16 : f32
    %60 = vector.broadcast %cst_21 : f32 to vector<2x1xf32>
    %61 = arith.maximumf %59, %60 : vector<2x1xf32>
    %62 = math.rsqrt %61 : vector<2x1xf32>
    %63 = arith.mulf %53, %62 : vector<2x1xf32>
    %64 = arith.subf %63, %58 : vector<2x1xf32>
    %cst_22 = arith.constant 1.000000e-01 : f32
    %65 = vector.broadcast %cst_22 : f32 to vector<2x1xf32>
    %66 = arith.addf %64, %65 : vector<2x1xf32>
    %cst_23 = arith.constant 0.000000e+00 : f32
    %67 = vector.broadcast %cst_23 : f32 to vector<2x1xf32>
    %68 = arith.maximumf %66, %67 : vector<2x1xf32>
    %c0_24 = arith.constant 0 : index
    %c1 = arith.constant 1 : index
    %69 = vector.load %arg4[%c0_24, %c1] : memref<2x4xf32, #tpu.memory_space<vmem>>, vector<2x1xf32>
    tpu.vector_store %arg4[%c0_24, %c1], %68 {strides = array<i32>} : memref<2x4xf32, #tpu.memory_space<vmem>>, vector<2x1xf32>,
    %70 = vector.extract_strided_slice %3 {offsets = [0, 64], sizes = [2, 32], strides = [1, 1]} : vector<2x128xf32> to vector<2x32xf32>
    %cst_25 = arith.constant dense<0.000000e+00> : vector<2xf32>
    %71 = vector.multi_reduction <add>, %70, %cst_25 [1] : vector<2x32xf32> to vector<2xf32>
    %72 = vector.shape_cast %71 : vector<2xf32> to vector<2x1xf32>
    %73 = vector.extract_strided_slice %4 {offsets = [0, 64], sizes = [2, 32], strides = [1, 1]} : vector<2x128xf32> to vector<2x32xf32>
    %cst_26 = arith.constant dense<0.000000e+00> : vector<2xf32>
    %74 = vector.multi_reduction <add>, %73, %cst_26 [1] : vector<2x32xf32> to vector<2xf32>
    %75 = vector.shape_cast %74 : vector<2xf32> to vector<2x1xf32>
    %76 = vector.extract_strided_slice %5 {offsets = [0, 64], sizes = [2, 32], strides = [1, 1]} : vector<2x128xf32> to vector<2x32xf32>
    %cst_27 = arith.constant dense<0.000000e+00> : vector<2xf32>
    %77 = vector.multi_reduction <add>, %76, %cst_27 [1] : vector<2x32xf32> to vector<2xf32>
    %78 = vector.shape_cast %77 : vector<2xf32> to vector<2x1xf32>
    %79 = vector.extract_strided_slice %6 {offsets = [0, 64], sizes = [2, 32], strides = [1, 1]} : vector<2x128xf32> to vector<2x32xf32>
    %cst_28 = arith.constant dense<0.000000e+00> : vector<2xf32>
    %80 = vector.multi_reduction <add>, %79, %cst_28 [1] : vector<2x32xf32> to vector<2xf32>
    %81 = vector.shape_cast %80 : vector<2xf32> to vector<2x1xf32>
    %82 = vector.extract_strided_slice %7 {offsets = [0, 64], sizes = [2, 32], strides = [1, 1]} : vector<2x128xf32> to vector<2x32xf32>
    %cst_29 = arith.constant dense<0.000000e+00> : vector<2xf32>
    %83 = vector.multi_reduction <add>, %82, %cst_29 [1] : vector<2x32xf32> to vector<2xf32>
    %84 = vector.shape_cast %83 : vector<2xf32> to vector<2x1xf32>
    %85 = arith.mulf %72, %75 : vector<2x1xf32>
    %cst_30 = arith.constant 1.000000e-16 : f32
    %86 = vector.broadcast %cst_30 : f32 to vector<2x1xf32>
    %87 = arith.maximumf %85, %86 : vector<2x1xf32>
    %88 = math.rsqrt %87 : vector<2x1xf32>
    %89 = arith.mulf %81, %88 : vector<2x1xf32>
    %90 = arith.mulf %72, %78 : vector<2x1xf32>
    %cst_31 = arith.constant 1.000000e-16 : f32
    %91 = vector.broadcast %cst_31 : f32 to vector<2x1xf32>
    %92 = arith.maximumf %90, %91 : vector<2x1xf32>
    %93 = math.rsqrt %92 : vector<2x1xf32>
    %94 = arith.mulf %84, %93 : vector<2x1xf32>
    %95 = arith.subf %94, %89 : vector<2x1xf32>
    %cst_32 = arith.constant 1.000000e-01 : f32
    %96 = vector.broadcast %cst_32 : f32 to vector<2x1xf32>
    %97 = arith.addf %95, %96 : vector<2x1xf32>
    %cst_33 = arith.constant 0.000000e+00 : f32
    %98 = vector.broadcast %cst_33 : f32 to vector<2x1xf32>
    %99 = arith.maximumf %97, %98 : vector<2x1xf32>
    %c0_34 = arith.constant 0 : index
    %c2 = arith.constant 2 : index
    %100 = vector.load %arg4[%c0_34, %c2] : memref<2x4xf32, #tpu.memory_space<vmem>>, vector<2x1xf32>
    tpu.vector_store %arg4[%c0_34, %c2], %99 {strides = array<i32>} : memref<2x4xf32, #tpu.memory_space<vmem>>, vector<2x1xf32>,
    %101 = vector.extract_strided_slice %3 {offsets = [0, 96], sizes = [2, 32], strides = [1, 1]} : vector<2x128xf32> to vector<2x32xf32>
    %cst_35 = arith.constant dense<0.000000e+00> : vector<2xf32>
    %102 = vector.multi_reduction <add>, %101, %cst_35 [1] : vector<2x32xf32> to vector<2xf32>
    %103 = vector.shape_cast %102 : vector<2xf32> to vector<2x1xf32>
    %104 = vector.extract_strided_slice %4 {offsets = [0, 96], sizes = [2, 32], strides = [1, 1]} : vector<2x128xf32> to vector<2x32xf32>
    %cst_36 = arith.constant dense<0.000000e+00> : vector<2xf32>
    %105 = vector.multi_reduction <add>, %104, %cst_36 [1] : vector<2x32xf32> to vector<2xf32>
    %106 = vector.shape_cast %105 : vector<2xf32> to vector<2x1xf32>
    %107 = vector.extract_strided_slice %5 {offsets = [0, 96], sizes = [2, 32], strides = [1, 1]} : vector<2x128xf32> to vector<2x32xf32>
    %cst_37 = arith.constant dense<0.000000e+00> : vector<2xf32>
    %108 = vector.multi_reduction <add>, %107, %cst_37 [1] : vector<2x32xf32> to vector<2xf32>
    %109 = vector.shape_cast %108 : vector<2xf32> to vector<2x1xf32>
    %110 = vector.extract_strided_slice %6 {offsets = [0, 96], sizes = [2, 32], strides = [1, 1]} : vector<2x128xf32> to vector<2x32xf32>
    %cst_38 = arith.constant dense<0.000000e+00> : vector<2xf32>
    %111 = vector.multi_reduction <add>, %110, %cst_38 [1] : vector<2x32xf32> to vector<2xf32>
    %112 = vector.shape_cast %111 : vector<2xf32> to vector<2x1xf32>
    %113 = vector.extract_strided_slice %7 {offsets = [0, 96], sizes = [2, 32], strides = [1, 1]} : vector<2x128xf32> to vector<2x32xf32>
    %cst_39 = arith.constant dense<0.000000e+00> : vector<2xf32>
    %114 = vector.multi_reduction <add>, %113, %cst_39 [1] : vector<2x32xf32> to vector<2xf32>
    %115 = vector.shape_cast %114 : vector<2xf32> to vector<2x1xf32>
    %116 = arith.mulf %103, %106 : vector<2x1xf32>
    %cst_40 = arith.constant 1.000000e-16 : f32
    %117 = vector.broadcast %cst_40 : f32 to vector<2x1xf32>
    %118 = arith.maximumf %116, %117 : vector<2x1xf32>
    %119 = math.rsqrt %118 : vector<2x1xf32>
    %120 = arith.mulf %112, %119 : vector<2x1xf32>
    %121 = arith.mulf %103, %109 : vector<2x1xf32>
    %cst_41 = arith.constant 1.000000e-16 : f32
    %122 = vector.broadcast %cst_41 : f32 to vector<2x1xf32>
    %123 = arith.maximumf %121, %122 : vector<2x1xf32>
    %124 = math.rsqrt %123 : vector<2x1xf32>
    %125 = arith.mulf %115, %124 : vector<2x1xf32>
    %126 = arith.subf %125, %120 : vector<2x1xf32>
    %cst_42 = arith.constant 1.000000e-01 : f32
    %127 = vector.broadcast %cst_42 : f32 to vector<2x1xf32>
    %128 = arith.addf %126, %127 : vector<2x1xf32>
    %cst_43 = arith.constant 0.000000e+00 : f32
    %129 = vector.broadcast %cst_43 : f32 to vector<2x1xf32>
    %130 = arith.maximumf %128, %129 : vector<2x1xf32>
    %c0_44 = arith.constant 0 : index
    %c3 = arith.constant 3 : index
    %131 = vector.load %arg4[%c0_44, %c3] : memref<2x4xf32, #tpu.memory_space<vmem>>, vector<2x1xf32>
    tpu.vector_store %arg4[%c0_44, %c3], %130 {strides = array<i32>} : memref<2x4xf32, #tpu.memory_space<vmem>>, vector<2x1xf32>,
    return
  }
  func.func @transform_0(%arg0: i32) -> (i32, i32) {
    %c0_i32 = arith.constant 0 : i32
    %c0_i32_0 = arith.constant 0 : i32
    return %arg0, %c0_i32 : i32, i32
  }
  func.func @transform_1(%arg0: i32) -> (i32, i32) {
    %c0_i32 = arith.constant 0 : i32
    %c0_i32_0 = arith.constant 0 : i32
    return %arg0, %c0_i32 : i32, i32
  }
  func.func @transform_2(%arg0: i32) -> (i32, i32) {
    %c0_i32 = arith.constant 0 : i32
    %c0_i32_0 = arith.constant 0 : i32
    return %arg0, %c0_i32 : i32, i32
  }
  func.func @transform_3(%arg0: i32) -> (i32, i32) {
    %c0_i32 = arith.constant 0 : i32
    %c0_i32_0 = arith.constant 0 : i32
    return %arg0, %c0_i32 : i32, i32
  }
}

</mosaic_0001>

<bundles_post_ra>
// kernel: tpu_custom_call.1
= control target key start
LH: loop header
LB: loop body
LE: loop exit
PB: predicated region body
PF: predicated region fallthrough
CT: control target
= control target key end

     0   :  { %8 = vsyncpa [#allocation3], 0  ;;  %s392_s0 = inlined_call_operand.hbm [shape: f32[2,128], index: 0, kind: input, shape index: {}]   ;;  %s393_s1 = inlined_call_operand.vmem [shape: f32[2,128], index: 1, kind: input, shape index: {}]   ;;  %s394_s2 = inlined_call_operand.vmem [shape: f32[2,128], index: 2, kind: input, shape index: {}]   ;;  %s395_s3 = inlined_call_operand.hbm [shape: f32[2,4], index: 3, kind: output, shape index: {}]  }
   0x1   :  { %9 = vsyncpa [#allocation4], 0  ;;  %s282_s12 = smov [#allocation2]   ;;  %s234_s16 = scalar_lea.hbm %s392_s0, 32 }
   0x2   :  { %s16_s13 = sshll.u32 %s282_s12, 4  ;;  %p235_p0 = scmp.ne.s32.totalorder %s392_s0, %s234_s16  ;;  %s17_s13 = int_to_ptr.vmem [resolvable:$true] %s16_s13 }
   0x3   :  { %p238_p1 = scmp.lt.u32.totalorder %s234_s16, %s392_s0 }
   0x5   :  { %p240_p2 = pnand %p238_p1, %p235_p0 }
   0x7   :  { %243 = shalt.err (!%p240_p2)
}
   0x8   :  { %s244_s21 = scalar_lea.vmem %s17_s13, 32  ;;  %p249_p4 = scmp.lt.s32.totalorder %s17_s13, %s17_s13 }
   0x9   :  { %p245_p3 = scmp.ne.s32.totalorder %s17_s13, %s244_s21  ;;  %p250_p5 = scmp.lt.s32.totalorder %s244_s21, %s244_s21 }
   0xb   :  { %p251_p6 = por %p250_p5, %p249_p4 }
   0xd   :  { %p252_p7 = pnand %p251_p6, %p245_p3 }
   0xf   :  { %255 = shalt.err (!%p252_p7)
}
  0x10   :  { %19 = dma.hbm_to_vmem [thread:$0]  %s392_s0, 32, %s17_s13, [#allocation3]  }
  0x11   :  { %278 = dma.done.wait [#allocation3], 32  }
  0x12   :  { %279 = vsyncadd [#allocation3], 4294967264  ;;  %vm35_vm0 = vcmask 254976   ;;  %v29_v0 = vld [vmem:[%s394_s2] sm:$0x3]  ;;  %s283_s0 = smov 96  }
  0x13   :  { %v27_v1 = vld [vmem:[#allocation2] sm:$0x3]  ;;  %v325_v3 = vmul.f32 %v29_v0, %v29_v0  ;;  %vm62_vm1 = vcmask 1024   ;;  %vm110_vm2 = vcmask 9224   ;;  %s285_s2 = smov 32   ;;  %vm153_vm3 = vcmask 17424  }
  0x14   :  { %v28_v2 = vld [vmem:[%s393_s1] sm:$0x3]  ;;  %v327_v4 = vmul.f32 %v27_v1, %v27_v1  ;;  %v341_v11 = vmul.f32 %v29_v0, %v27_v1  ;;  %s284_s1 = smov 64   ;;  %s286_s28 = smov [#allocation5]   ;;  %vm196_vm4 = vcmask 25624  }
  0x15   :  { %v329_v5 = vmul.f32 %v28_v2, %v28_v2  ;;  %v331_v6 = vmul.f32 %v28_v2, %v27_v1  ;;  %v42_v7 = vsel %vm35_vm0, %v325_v3, 0.0  ;;  %s204_s29 = sshll.u32 %s286_s28, 4  ;;  %s205_s29 = int_to_ptr.vmem [resolvable:$true] %s204_s29 }
  0x16   :  { %v36_v8 = vsel %vm35_vm0, %v327_v4, 0.0  ;;  %43 = vadd.xlane.f32.xlu1 %v42_v7  ;;  %v48_v12 = vsel %vm35_vm0, %v341_v11, 0.0  ;;  %s256_s30 = scalar_lea.vmem %s205_s29, 32  ;;  %p261_p9 = scmp.lt.s32.totalorder %s205_s29, %s205_s29 }
  0x17   :  { %37 = vadd.xlane.f32.xlu0 %v36_v8  ;;  %v39_v9 = vsel %vm35_vm0, %v329_v5, 0.0  ;;  %v45_v10 = vsel %vm35_vm0, %v331_v6, 0.0  ;;  %p257_p8 = scmp.ne.s32.totalorder %s205_s29, %s256_s30  ;;  %p262_p10 = scmp.lt.s32.totalorder %s256_s30, %s256_s30 }
  0x19   :  { %p263_p11 = por %p262_p10, %p261_p9 }
  0x1a   :  { %46 = vadd.xlane.f32.xlu1 %v45_v10 }
  0x1b   :  { %40 = vadd.xlane.f32.xlu0 %v39_v9  ;;  %p264_p12 = pnand %p263_p11, %p257_p8 }
  0x1f   :  { %49 = vadd.xlane.f32.xlu0 %v48_v12 }
  0x2b   :  { %65 = vrot.lane.b32.xlu1 %v327_v4, %s283_s0 }
  0x2f   :  { %86 = vrot.lane.b32.xlu1 %v331_v6, %s283_s0 }
  0x35   :  { %72 = vrot.lane.b32.xlu0 %v329_v5, %s283_s0 }
  0x39   :  { %79 = vrot.lane.b32.xlu0 %v325_v3, %s283_s0 }
  0x3d   :  { %93 = vrot.lane.b32.xlu0 %v341_v11, %s283_s0 }
  0x41   :  { %112 = vrot.lane.b32.xlu0 %v327_v4, %s284_s1 }
  0xa3   :  { %v44_v13 = vpop.xlane.xlu1 %43 }
  0xa4   :  { %v38_v14 = vpop.xlane.xlu0 %37 }
  0xa5   :  { %v55_v15 = vmul.f32 %v44_v13, %v38_v14 }
  0xa7   :  { %v56_v16 = vmax.f32 %v55_v15, 1e-16  ;;  %v47_v18 = vpop.xlane.xlu1 %46 }
  0xa8   :  { %v41_v17 = vpop.xlane.xlu0 %40 }
  0xa9   :  { %v51_v19 = vmul.f32 %v41_v17, %v38_v14  ;;  %218 = vrsqrt.f32 %v56_v16 }
  0xab   :  { %v52_v20 = vmax.f32 %v51_v19, 1e-16  ;;  %v66_v22 = vpop.permute.xlu1 %65 }
  0xac   :  { %v50_v21 = vpop.xlane.xlu0 %49  ;;  %v68_v23 = vsel %vm35_vm0, %v66_v22, 0.0 }
  0xad   :  { %220 = vrsqrt.f32 %v52_v20  ;;  %69 = vadd.xlane.f32.xlu0 %v68_v23 }
  0xaf   :  { %v87_v27 = vpop.permute.xlu1 %86 }
  0xb0   :  { %v73_v24 = vpop.permute.xlu0 %72  ;;  %v89_v31 = vsel %vm35_vm0, %v87_v27, 0.0 }
  0xb1   :  { %v75_v25 = vsel %vm35_vm0, %v73_v24, 0.0 }
  0xb2   :  { %76 = vadd.xlane.f32.xlu1 %v75_v25 }
  0xb3   :  { %v219_v28 = vpop.eup %218 }
  0xb4   :  { %v80_v26 = vpop.permute.xlu0 %79  ;;  %v58_v33 = vmul.f32 %v219_v28, %v50_v21 }
  0xb5   :  { %v82_v29 = vsel %vm35_vm0, %v80_v26, 0.0 }
  0xb6   :  { %83 = vadd.xlane.f32.xlu0 %v82_v29 }
  0xb7   :  { %v221_v30 = vpop.eup %220 }
  0xb8   :  { %v54_v32 = vmul.f32 %v221_v30, %v47_v18  ;;  %v94_v34 = vpop.permute.xlu0 %93 }
  0xb9   :  { %v96_v35 = vsel %vm35_vm0, %v94_v34, 0.0 }
  0xba   :  { %v59_v36 = vsub.f32 %v58_v33, %v54_v32  ;;  %90 = vadd.xlane.f32.xlu0 %v89_v31  ;;  %97 = vadd.xlane.f32.xlu1 %v96_v35 }
  0xbc   :  { %v60_v37 = vadd.f32 0.1, %v59_v36  ;;  %v113_v38 = vpop.permute.xlu0 %112 }
  0xbd   :  { %v115_v39 = vsel %vm35_vm0, %v113_v38, 0.0 }
  0xbe   :  { %v61_v40 = vmax.f32 %v60_v37, 0.0  ;;  %116 = vadd.xlane.f32.xlu0 %v115_v39 }
  0xc0   :  { %63 = vst.msk [vmem:[#allocation5] sm:$0x3] %vm62_vm1, %v61_v40 }
  0xcb   :  { %118 = vrot.lane.b32.xlu1 %v329_v5, %s284_s1 }
  0xd4   :  { %124 = vrot.lane.b32.xlu0 %v325_v3, %s284_s1 }
 0x13a   :  { %v70_v41 = vpop.xlane.xlu0 %69 }
 0x13f   :  { %v77_v42 = vpop.xlane.xlu1 %76 }
 0x140   :  { %v99_v43 = vmul.f32 %v77_v42, %v70_v41 }
 0x142   :  { %v100_v44 = vmax.f32 %v99_v43, 1e-16 }
 0x143   :  { %v84_v45 = vpop.xlane.xlu0 %83 }
 0x144   :  { %v103_v46 = vmul.f32 %v84_v45, %v70_v41  ;;  %222 = vrsqrt.f32 %v100_v44 }
 0x146   :  { %v104_v47 = vmax.f32 %v103_v46, 1e-16 }
 0x147   :  { %v98_v48 = vpop.xlane.xlu1 %97  ;;  %v91_v49 = vpop.xlane.xlu0 %90 }
 0x148   :  { %224 = vrsqrt.f32 %v104_v47 }
 0x14b   :  { %v119_v50 = vpop.permute.xlu1 %118  ;;  %v117_v51 = vpop.xlane.xlu0 %116 }
 0x14c   :  { %v121_v52 = vsel %vm35_vm0, %v119_v50, 0.0 }
 0x14d   :  { %122 = vadd.xlane.f32.xlu1 %v121_v52 }
 0x14e   :  { %v223_v54 = vpop.eup %222 }
 0x14f   :  { %v125_v53 = vpop.permute.xlu0 %124  ;;  %v102_v58 = vmul.f32 %v223_v54, %v91_v49 }
 0x150   :  { %v127_v55 = vsel %vm35_vm0, %v125_v53, 0.0 }
 0x151   :  { %128 = vadd.xlane.f32.xlu0 %v127_v55 }
 0x152   :  { %v225_v56 = vpop.eup %224 }
 0x153   :  { %v106_v57 = vmul.f32 %v225_v56, %v98_v48 }
 0x155   :  { %v107_v59 = vsub.f32 %v106_v57, %v102_v58 }
 0x157   :  { %v108_v60 = vadd.f32 0.1, %v107_v59 }
 0x159   :  { %v109_v61 = vmax.f32 %v108_v60, 0.0 }
 0x15b   :  { %111 = vst.msk [vmem:[#allocation5] sm:$0x3] %vm110_vm2, %v109_v61 }
 0x15e   :  { %130 = vrot.lane.b32.xlu1 %v331_v6, %s284_s1 }
 0x167   :  { %136 = vrot.lane.b32.xlu0 %v341_v11, %s284_s1 }
 0x16b   :  { %155 = vrot.lane.b32.xlu0 %v327_v4, %s285_s2 }
 0x16f   :  { %161 = vrot.lane.b32.xlu0 %v329_v5, %s285_s2 }
 0x173   :  { %167 = vrot.lane.b32.xlu0 %v325_v3, %s285_s2 }
 0x177   :  { %173 = vrot.lane.b32.xlu0 %v331_v6, %s285_s2 }
 0x1da   :  { %v123_v62 = vpop.xlane.xlu1 %122 }
 0x1db   :  { %v142_v13 = vmul.f32 %v123_v62, %v117_v51 }
 0x1dd   :  { %v143_v15 = vmax.f32 %v142_v13, 1e-16 }
 0x1de   :  { %v131_v63 = vpop.permute.xlu1 %130  ;;  %v129_v0 = vpop.xlane.xlu0 %128 }
 0x1df   :  { %v133_v1 = vsel %vm35_vm0, %v131_v63, 0.0  ;;  %v146_v14 = vmul.f32 %v129_v0, %v117_v51  ;;  %226 = vrsqrt.f32 %v143_v15 }
 0x1e0   :  { %134 = vadd.xlane.f32.xlu1 %v133_v1 }
 0x1e1   :  { %v147_v16 = vmax.f32 %v146_v14, 1e-16 }
 0x1e2   :  { %v137_v2 = vpop.permute.xlu0 %136 }
 0x1e3   :  { %v139_v7 = vsel %vm35_vm0, %v137_v2, 0.0  ;;  %228 = vrsqrt.f32 %v147_v16 }
 0x1e4   :  { %140 = vadd.xlane.f32.xlu1 %v139_v7 }
 0x1e6   :  { %v156_v8 = vpop.permute.xlu0 %155 }
 0x1e7   :  { %v158_v9 = vsel %vm35_vm0, %v156_v8, 0.0 }
 0x1e8   :  { %159 = vadd.xlane.f32.xlu0 %v158_v9 }
 0x1e9   :  { %v227_v18 = vpop.eup %226 }
 0x1ea   :  { %v162_v4 = vpop.permute.xlu0 %161 }
 0x1eb   :  { %v164_v12 = vsel %vm35_vm0, %v162_v4, 0.0 }
 0x1ed   :  { %v229_v19 = vpop.eup %228 }
 0x1ee   :  { %v168_v5 = vpop.permute.xlu0 %167 }
 0x1ef   :  { %v170_v3 = vsel %vm35_vm0, %v168_v5, 0.0 }
 0x1f0   :  { %171 = vadd.xlane.f32.xlu0 %v170_v3 }
 0x1f2   :  { %v174_v6 = vpop.permute.xlu0 %173 }
 0x1f3   :  { %v176_v10 = vsel %vm35_vm0, %v174_v6, 0.0 }
 0x1f4   :  { %177 = vadd.xlane.f32.xlu0 %v176_v10 }
 0x1f5   :  { %179 = vrot.lane.b32.xlu1 %v341_v11, %s285_s2 }
 0x219   :  { %165 = vadd.xlane.f32.xlu1 %v164_v12 }
 0x26d   :  { %v135_v17 = vpop.xlane.xlu1 %134 }
 0x26e   :  { %v145_v21 = vmul.f32 %v227_v18, %v135_v17 }
 0x271   :  { %v141_v20 = vpop.xlane.xlu1 %140 }
 0x272   :  { %v149_v22 = vmul.f32 %v229_v19, %v141_v20 }
 0x274   :  { %v150_v23 = vsub.f32 %v149_v22, %v145_v21 }
 0x275   :  { %v180_v24 = vpop.permute.xlu1 %179  ;;  %v160_v27 = vpop.xlane.xlu0 %159 }
 0x276   :  { %v151_v25 = vadd.f32 0.1, %v150_v23  ;;  %v182_v11 = vsel %vm35_vm0, %v180_v24, 0.0 }
 0x277   :  { %183 = vadd.xlane.f32.xlu0 %v182_v11 }
 0x278   :  { %v152_v26 = vmax.f32 %v151_v25, 0.0 }
 0x27a   :  { %154 = vst.msk [vmem:[#allocation5] sm:$0x3] %vm153_vm3, %v152_v26 }
 0x27d   :  { %v172_v29 = vpop.xlane.xlu0 %171 }
 0x27e   :  { %v189_v31 = vmul.f32 %v172_v29, %v160_v27 }
 0x280   :  { %v190_v33 = vmax.f32 %v189_v31, 1e-16 }
 0x281   :  { %v178_v34 = vpop.xlane.xlu0 %177 }
 0x2a6   :  { %v166_v28 = vpop.xlane.xlu1 %165 }
 0x2a7   :  { %v185_v30 = vmul.f32 %v166_v28, %v160_v27 }
 0x2a9   :  { %v186_v32 = vmax.f32 %v185_v30, 1e-16 }
 0x2ab   :  { %230 = vrsqrt.f32 %v186_v32 }
 0x2ac   :  { %232 = vrsqrt.f32 %v190_v33 }
 0x2b5   :  { %v231_v35 = vpop.eup %230 }
 0x2b6   :  { %v233_v36 = vpop.eup %232  ;;  %v188_v38 = vmul.f32 %v231_v35, %v178_v34 }
 0x304   :  { %v184_v37 = vpop.xlane.xlu0 %183 }
 0x305   :  { %v192_v39 = vmul.f32 %v233_v36, %v184_v37 }
 0x307   :  { %v193_v40 = vsub.f32 %v192_v39, %v188_v38 }
 0x309   :  { %v194_v41 = vadd.f32 0.1, %v193_v40 }
 0x30b   :  { %v195_v42 = vmax.f32 %v194_v41, 0.0 }
 0x30d   :  { %197 = vst.msk [vmem:[#allocation5] sm:$0x3] %vm196_vm4, %v195_v42 }
 0x30e   :  { %267 = shalt.err (!%p264_p12)
}
 0x30f   :  { %s268_s6 = scalar_lea.hbm %s395_s3, 32 }
 0x310   :  { %p269_p13 = scmp.ne.s32.totalorder %s395_s3, %s268_s6  ;;  %p272_p0 = scmp.lt.u32.totalorder %s268_s6, %s395_s3 }
 0x312   :  { %p274_p1 = pnand %p272_p0, %p269_p13 }
 0x314   :  { %277 = shalt.err (!%p274_p1)
}
 0x315   :  { %207 = dma.vmem_to_hbm [thread:$0]  %s205_s29, 32, %s395_s3, [#allocation4]  }
 0x316   :  { %280 = dma.done.wait [#allocation4], 32  }
 0x317   :  { %281 = vsyncadd [#allocation4], 4294967264 }
 0x318   :  { %211 = vsyncpa [#allocation3], 1 }
 0x319   :  { %212 = vsyncpa [#allocation4], 1 }

</bundles_post_ra>
